<compile_context>
chip_gen: v5e
topology: v5e:2x2
jax: 0.10.0
libtpu: 0.0.40
codegen_flags: <defaults>
</compile_context>

<pallas_src>
import jax
import jax.numpy as jnp
from jax.experimental import pallas as pl
from jax.experimental.pallas import tpu as pltpu


# ---------------------------------------------------------------------------
# Pass 1: per-channel spatial sums, one block per (batch, channel-tile).
# ---------------------------------------------------------------------------
def pool_kernel(x_ref, sum_ref):
    # x_ref:   (1, c_tile, HW)
    # sum_ref: (1, 1, 1, c_tile)   (distinct block per grid point -> fully parallel)
    s = jnp.sum(x_ref[...].astype(jnp.float32), axis=-1)      # (1, c_tile)
    sum_ref[...] = s[:, None, None, :]


# ---------------------------------------------------------------------------
# Pass 2: excitation MLP (folded) + channel rescale, tile by tile.
# ---------------------------------------------------------------------------
def make_scale_kernel(inv_hw, narrow_dtype):
    def scale_kernel(pooled_ref, w1_ref, b1_ref, w2_ref, b2_ref, x_ref, o_ref):
        # pooled_ref: (1, 1, C) f32    w1: (C, mid)   b1: (1, mid)
        # w2: (mid, c_tile) chunk      b2: (1, c_tile) chunk
        # x_ref / o_ref: (1, c_tile, HW)
        y = pooled_ref[0] * inv_hw                              # (1, C) mean
        h = jnp.dot(y, w1_ref[...], preferred_element_type=jnp.float32)
        h = jnp.maximum(h + b1_ref[...], 0.0)                   # (1, mid)
        s = jnp.dot(h, w2_ref[...], preferred_element_type=jnp.float32)
        g = jax.nn.sigmoid(s + b2_ref[...])                     # (1, c_tile) f32
        g = g[:, :, None]                                       # (1, c_tile, 1)

        x = x_ref[...]                                          # (1, c_tile, HW)
        if narrow_dtype:
            # bf16/fp16 path: multiply natively (halves vreg traffic on v6e/v7x;
            # Mosaic widens automatically on v5e).
            o_ref[...] = x * g.astype(x.dtype)
        else:
            o_ref[...] = (x.astype(jnp.float32) * g).astype(o_ref.dtype)
    return scale_kernel


# ---------------------------------------------------------------------------
# Wrapper
# ---------------------------------------------------------------------------
def _vmem_capacity_bytes():
    default = 64 * 1024 * 1024          # most conservative per-core VMEM (v7x)
    try:
        info = pltpu.get_tpu_info()
        cap = getattr(info, "vmem_capacity_bytes", None)
        return int(cap) if cap else default
    except Exception:
        return default


def se_block(x, w1, b1, w2, b2, *, donate_x=False):
    """x: (B, C, H, W).  Returns (B, C, H, W). Matches PyTorch SEBlock.forward."""
    B, C, H, W = x.shape
    HW = H * W
    mid = w1.shape[1]
    dtype = x.dtype
    itemsize = jnp.dtype(dtype).itemsize
    narrow = itemsize < 4

    LANE = 128
    hw_lanes = pl.cdiv(HW, LANE) * LANE           # lane-padded VMEM row footprint
    row_bytes = hw_lanes * itemsize

    # Generation-aware VMEM budget: 48 MiB on v7x (64 MiB/TC), 96 MiB on v5e/v6e.
    vmem_cap = _vmem_capacity_bytes()
    vmem_limit = min((vmem_cap * 3) // 4, 100 * 1024 * 1024)
    # Small resident operands (double-buffered, f32): w1, w2 chunk, biases, pooled.
    fixed = 2 * 4 * (2 * C * mid + 2 * C + mid)
    # 2x in + 2x out buffers of the x tile must fit in ~80% of the limit.
    tile_budget = max((int(vmem_limit * 0.8) - fixed) // 4, LANE * row_bytes)

    if C * row_bytes <= tile_budget or C <= LANE:
        c_tile = C                                # full-channel block (common case)
    else:
        # Largest 128-multiple of channels that fits; prefer a divisor of C so the
        # last block isn't partially masked (unless that halves the tile).
        c_tile = max(LANE, (tile_budget // row_bytes) // LANE * LANE)
        c_tile = min(c_tile, C)
        best = 0
        for d in range(c_tile, LANE - 1, -LANE):
            if C % d == 0:
                best = d
                break
        if best >= max(LANE, c_tile // 2):
            c_tile = best
    n_ct = pl.cdiv(C, c_tile)
    c_scr = n_ct * c_tile                         # >= C (padded only if non-divisor)

    x3 = x.reshape(B, C, HW)                      # free reshape, no pad

    # ---- Pass 1: pooled per-channel sums --------------------------------------
    pooled = pl.pallas_call(
        pool_kernel,
        out_shape=jax.ShapeDtypeStruct((B, n_ct, 1, c_tile), jnp.float32),
        grid_spec=pltpu.PrefetchScalarGridSpec(
            num_scalar_prefetch=0,
            grid=(B, n_ct),
            in_specs=[pl.BlockSpec((1, c_tile, HW), lambda b, ct: (b, ct, 0))],
            out_specs=pl.BlockSpec((1, 1, 1, c_tile), lambda b, ct: (b, ct, 0, 0)),
        ),
        compiler_params=pltpu.CompilerParams(
            dimension_semantics=("parallel", "parallel"),
            vmem_limit_bytes=vmem_limit),
        cost_estimate=pl.CostEstimate(
            flops=B * C * HW,
            transcendentals=0,
            bytes_accessed=B * C * HW * itemsize + B * c_scr * 4),
    )(x3)

    pooled2 = pooled.reshape(B, c_scr)            # tiny (B, C_scr) relayout
    if c_scr != C:
        pooled2 = pooled2[:, :C]                  # drop masked tail channels
    pooled2 = pooled2.reshape(B, 1, C)

    # ---- Pass 2: folded excitation MLP + rescale -------------------------------
    io_alias = {5: 0} if donate_x else {}
    out3 = pl.pallas_call(
        make_scale_kernel(1.0 / float(HW), narrow),
        out_shape=jax.ShapeDtypeStruct((B, C, HW), dtype),
        grid_spec=pltpu.PrefetchScalarGridSpec(
            num_scalar_prefetch=0,
            grid=(B, n_ct),
            in_specs=[
                pl.BlockSpec((1, 1, C), lambda b, ct: (b, 0, 0)),         # pooled
                pl.BlockSpec((C, mid), lambda b, ct: (0, 0)),             # w1
                pl.BlockSpec((1, mid), lambda b, ct: (0, 0)),             # b1
                pl.BlockSpec((mid, c_tile), lambda b, ct: (0, ct)),       # w2 chunk
                pl.BlockSpec((1, c_tile), lambda b, ct: (0, ct)),         # b2 chunk
                pl.BlockSpec((1, c_tile, HW), lambda b, ct: (b, ct, 0)),  # x tile
            ],
            out_specs=pl.BlockSpec((1, c_tile, HW), lambda b, ct: (b, ct, 0)),
        ),
        compiler_params=pltpu.CompilerParams(
            dimension_semantics=("parallel", "parallel"),
            vmem_limit_bytes=vmem_limit),
        cost_estimate=pl.CostEstimate(
            flops=2 * B * C * HW + 4 * B * C * mid,
            transcendentals=B * C,
            bytes_accessed=2 * B * C * HW * itemsize
                           + B * C * 4 + 2 * C * mid * 4),
        input_output_aliases=io_alias,
    )(pooled2, w1, b1.reshape(1, mid), w2, b2.reshape(1, C), x3)

    return out3.reshape(B, C, H, W)


# ---------------------------------------------------------------------------
# Params / reference
# ---------------------------------------------------------------------------
def init_params(key, input_dim, reduction):
    """Deterministic init mimicking nn.Linear default (uniform +/- 1/sqrt(fan_in)).

    Weights stored transposed vs PyTorch (in_features, out_features) so the
    kernel computes y @ W."""
    mid = int(input_dim / reduction)
    k1, k2, k3, k4 = jax.random.split(key, 4)
    bound1 = 1.0 / jnp.sqrt(jnp.float32(input_dim))
    bound2 = 1.0 / jnp.sqrt(jnp.float32(mid))
    w1 = jax.random.uniform(k1, (input_dim, mid), jnp.float32, -bound1, bound1)
    b1 = jax.random.uniform(k2, (mid,), jnp.float32, -bound1, bound1)
    w2 = jax.random.uniform(k3, (mid, input_dim), jnp.float32, -bound2, bound2)
    b2 = jax.random.uniform(k4, (input_dim,), jnp.float32, -bound2, bound2)
    return w1, b1, w2, b2


def se_block_ref(x, w1, b1, w2, b2):
    """Pure-JAX reference matching the PyTorch forward."""
    y = jnp.mean(x, axis=(2, 3))                       # (B, C)
    h = jnp.maximum(y @ w1 + b1, 0.0)
    s = jax.nn.sigmoid(h @ w2 + b2)                    # (B, C)
    return x * s[:, :, None, None]


if __name__ == "__main__":
    key = jax.random.PRNGKey(0)
    kx, kp = jax.random.split(key)

    B, C, H, W = 2, 4, 16, 16
    reduction = 2

    x = jax.random.normal(kx, (B, C, H, W), jnp.float32)
    w1, b1, w2, b2 = init_params(kp, C, reduction)

    out = jax.jit(se_block)(x, w1, b1, w2, b2)
    out = jax.block_until_ready(out)

    ref = se_block_ref(x, w1, b1, w2, b2)
    assert out.shape == (B, C, H, W)
    assert jnp.allclose(out, ref, atol=1e-5, rtol=1e-5), "mismatch vs reference"

    print("KERNEL_OK")
</pallas_src>

<mosaic_0001>
module attributes {stable_mosaic.version = 11 : i64} {
  func.func @pool_kernel(%arg0: i32, %arg1: i32, %arg2: memref<1x4x256xf32, #tpu.memory_space<vmem>>, %arg3: memref<1x1x1x4xf32, #tpu.memory_space<vmem>>) attributes {dimension_semantics = [#tpu.dimension_semantics<parallel>, #tpu.dimension_semantics<parallel>], iteration_bounds = array<i64: 2, 1>, scalar_prefetch = 0 : i64, scratch_operands = 0 : i64, tpu.core_type = #tpu.core_type<tc>, window_params = [{transform_indices = @transform_0, window_bounds = array<i64: 1, 4, 256>}, {transform_indices = @transform_1, window_bounds = array<i64: 1, 1, 1, 4>}]} {
    %c0 = arith.constant 0 : index
    %c0_0 = arith.constant 0 : index
    %c0_1 = arith.constant 0 : index
    %0 = vector.load %arg2[%c0, %c0_0, %c0_1] : memref<1x4x256xf32, #tpu.memory_space<vmem>>, vector<1x4x256xf32>
    %cst = arith.constant dense<0.000000e+00> : vector<1x4xf32>
    %1 = vector.multi_reduction <add>, %0, %cst [2] : vector<1x4x256xf32> to vector<1x4xf32>
    %2 = vector.shape_cast %1 : vector<1x4xf32> to vector<1x1x1x4xf32>
    %c0_2 = arith.constant 0 : index
    %c0_3 = arith.constant 0 : index
    %c0_4 = arith.constant 0 : index
    %c0_5 = arith.constant 0 : index
    %3 = vector.load %arg3[%c0_2, %c0_3, %c0_4, %c0_5] : memref<1x1x1x4xf32, #tpu.memory_space<vmem>>, vector<1x1x1x4xf32>
    tpu.vector_store %arg3[%c0_2, %c0_3, %c0_4, %c0_5], %2 {strides = array<i32>} : memref<1x1x1x4xf32, #tpu.memory_space<vmem>>, vector<1x1x1x4xf32>,
    return
  }
  func.func @transform_0(%arg0: i32, %arg1: i32) -> (i32, i32, i32) {
    %c0_i32 = arith.constant 0 : i32
    %c0_i32_0 = arith.constant 0 : i32
    return %arg0, %arg1, %c0_i32 : i32, i32, i32
  }
  func.func @transform_1(%arg0: i32, %arg1: i32) -> (i32, i32, i32, i32) {
    %c0_i32 = arith.constant 0 : i32
    %c0_i32_0 = arith.constant 0 : i32
    %c0_i32_1 = arith.constant 0 : i32
    return %arg0, %arg1, %c0_i32, %c0_i32_0 : i32, i32, i32, i32
  }
}

module attributes {stable_mosaic.version = 11 : i64} {
  func.func @scale_kernel(%arg0: i32, %arg1: i32, %arg2: memref<1x1x4xf32, #tpu.memory_space<vmem>>, %arg3: memref<4x2xf32, #tpu.memory_space<vmem>>, %arg4: memref<1x2xf32, #tpu.memory_space<vmem>>, %arg5: memref<2x4xf32, #tpu.memory_space<vmem>>, %arg6: memref<1x4xf32, #tpu.memory_space<vmem>>, %arg7: memref<1x4x256xf32, #tpu.memory_space<vmem>>, %arg8: memref<1x4x256xf32, #tpu.memory_space<vmem>>) attributes {dimension_semantics = [#tpu.dimension_semantics<parallel>, #tpu.dimension_semantics<parallel>], iteration_bounds = array<i64: 2, 1>, scalar_prefetch = 0 : i64, scratch_operands = 0 : i64, tpu.core_type = #tpu.core_type<tc>, window_params = [{transform_indices = @transform_0, window_bounds = array<i64: 1, 1, 4>}, {pipeline_mode = #tpu.pipeline_mode<synchronous>, transform_indices = @transform_1, window_bounds = array<i64: 4, 2>}, {pipeline_mode = #tpu.pipeline_mode<synchronous>, transform_indices = @transform_2, window_bounds = array<i64: 1, 2>}, {transform_indices = @transform_3, window_bounds = array<i64: 2, 4>}, {transform_indices = @transform_4, window_bounds = array<i64: 1, 4>}, {transform_indices = @transform_5, window_bounds = array<i64: 1, 4, 256>}, {transform_indices = @transform_6, window_bounds = array<i64: 1, 4, 256>}]} {
    %c0 = arith.constant 0 : index
    %c0_0 = arith.constant 0 : index
    %c0_1 = arith.constant 0 : index
    %0 = vector.load %arg2[%c0, %c0_0, %c0_1] : memref<1x1x4xf32, #tpu.memory_space<vmem>>, vector<1x1x4xf32>
    %1 = vector.shape_cast %0 : vector<1x1x4xf32> to vector<1x4xf32>
    %cst = arith.constant 3.906250e-03 : f32
    %2 = vector.broadcast %cst : f32 to vector<1x4xf32>
    %3 = arith.mulf %1, %2 : vector<1x4xf32>
    %c0_2 = arith.constant 0 : index
    %c0_3 = arith.constant 0 : index
    %4 = vector.load %arg3[%c0_2, %c0_3] : memref<4x2xf32, #tpu.memory_space<vmem>>, vector<4x2xf32>
    %cst_4 = arith.constant dense<0.000000e+00> : vector<1x2xf32>
    %5 = tpu.matmul %3, %4, %cst_4 {dimension_numbers = #tpu.dot_dimension_numbers<[1], [0], [0], [1], [0, 0, 1, 1], [], []>} : vector<1x4xf32>, vector<4x2xf32>, vector<1x2xf32> -> vector<1x2xf32>
    %c0_5 = arith.constant 0 : index
    %c0_6 = arith.constant 0 : index
    %6 = vector.load %arg4[%c0_5, %c0_6] : memref<1x2xf32, #tpu.memory_space<vmem>>, vector<1x2xf32>
    %7 = arith.addf %5, %6 : vector<1x2xf32>
    %cst_7 = arith.constant 0.000000e+00 : f32
    %8 = vector.broadcast %cst_7 : f32 to vector<1x2xf32>
    %9 = arith.maximumf %7, %8 : vector<1x2xf32>
    %c0_8 = arith.constant 0 : index
    %c0_9 = arith.constant 0 : index
    %10 = vector.load %arg5[%c0_8, %c0_9] : memref<2x4xf32, #tpu.memory_space<vmem>>, vector<2x4xf32>
    %cst_10 = arith.constant dense<0.000000e+00> : vector<1x4xf32>
    %11 = tpu.matmul %9, %10, %cst_10 {dimension_numbers = #tpu.dot_dimension_numbers<[1], [0], [0], [1], [0, 0, 1, 1], [], []>} : vector<1x2xf32>, vector<2x4xf32>, vector<1x4xf32> -> vector<1x4xf32>
    %c0_11 = arith.constant 0 : index
    %c0_12 = arith.constant 0 : index
    %12 = vector.load %arg6[%c0_11, %c0_12] : memref<1x4xf32, #tpu.memory_space<vmem>>, vector<1x4xf32>
    %13 = arith.addf %11, %12 : vector<1x4xf32>
    %14 = arith.negf %13 : vector<1x4xf32>
    %15 = math.exp %14 : vector<1x4xf32>
    %cst_13 = arith.constant 1.000000e+00 : f32
    %16 = vector.broadcast %cst_13 : f32 to vector<1x4xf32>
    %17 = arith.addf %16, %15 : vector<1x4xf32>
    %18 = arith.divf %16, %17 : vector<1x4xf32>
    %19 = vector.shape_cast %18 : vector<1x4xf32> to vector<1x4x1xf32>
    %c0_14 = arith.constant 0 : index
    %c0_15 = arith.constant 0 : index
    %c0_16 = arith.constant 0 : index
    %20 = vector.load %arg7[%c0_14, %c0_15, %c0_16] : memref<1x4x256xf32, #tpu.memory_space<vmem>>, vector<1x4x256xf32>
    %21 = vector.broadcast %19 : vector<1x4x1xf32> to vector<1x4x256xf32>
    %22 = arith.mulf %20, %21 : vector<1x4x256xf32>
    %c0_17 = arith.constant 0 : index
    %c0_18 = arith.constant 0 : index
    %c0_19 = arith.constant 0 : index
    %23 = vector.load %arg8[%c0_17, %c0_18, %c0_19] : memref<1x4x256xf32, #tpu.memory_space<vmem>>, vector<1x4x256xf32>
    tpu.vector_store %arg8[%c0_17, %c0_18, %c0_19], %22 {strides = array<i32>} : memref<1x4x256xf32, #tpu.memory_space<vmem>>, vector<1x4x256xf32>,
    return
  }
  func.func @transform_0(%arg0: i32, %arg1: i32) -> (i32, i32, i32) {
    %c0_i32 = arith.constant 0 : i32
    %c0_i32_0 = arith.constant 0 : i32
    %c0_i32_1 = arith.constant 0 : i32
    return %arg0, %c0_i32, %c0_i32_0 : i32, i32, i32
  }
  func.func @transform_1(%arg0: i32, %arg1: i32) -> (i32, i32) {
    %c0_i32 = arith.constant 0 : i32
    %c0_i32_0 = arith.constant 0 : i32
    %c0_i32_1 = arith.constant 0 : i32
    return %c0_i32, %c0_i32_0 : i32, i32
  }
  func.func @transform_2(%arg0: i32, %arg1: i32) -> (i32, i32) {
    %c0_i32 = arith.constant 0 : i32
    %c0_i32_0 = arith.constant 0 : i32
    %c0_i32_1 = arith.constant 0 : i32
    return %c0_i32, %c0_i32_0 : i32, i32
  }
  func.func @transform_3(%arg0: i32, %arg1: i32) -> (i32, i32) {
    %c0_i32 = arith.constant 0 : i32
    %c0_i32_0 = arith.constant 0 : i32
    return %c0_i32, %arg1 : i32, i32
  }
  func.func @transform_4(%arg0: i32, %arg1: i32) -> (i32, i32) {
    %c0_i32 = arith.constant 0 : i32
    %c0_i32_0 = arith.constant 0 : i32
    return %c0_i32, %arg1 : i32, i32
  }
  func.func @transform_5(%arg0: i32, %arg1: i32) -> (i32, i32, i32) {
    %c0_i32 = arith.constant 0 : i32
    %c0_i32_0 = arith.constant 0 : i32
    return %arg0, %arg1, %c0_i32 : i32, i32, i32
  }
  func.func @transform_6(%arg0: i32, %arg1: i32) -> (i32, i32, i32) {
    %c0_i32 = arith.constant 0 : i32
    %c0_i32_0 = arith.constant 0 : i32
    return %arg0, %arg1, %c0_i32 : i32, i32, i32
  }
}

</mosaic_0001>

<bundles_post_ra>
// kernel: se_block.2
= control target key start
LH: loop header
LB: loop body
LE: loop exit
PB: predicated region body
PF: predicated region fallthrough
CT: control target
= control target key end

     0   :  { %s309_s6 = smov 0   ;;  %s311_s7 = smov 0   ;;  %s339_s0 = inlined_call_operand.vmem [shape: f32[2,4,256], index: 0, kind: input, shape index: {}]   ;;  %s340_s1 = inlined_call_operand.vmem [shape: f32[2,1,1,4], index: 1, kind: output, shape index: {}]  }
   0x1   :  { %s313_s8 = smov 0  }
   0x2 LB: > { %s23_s9 = sadd.s32 1, %s293_s7  ;;  %p245_p0 = scmp.ge.s32.totalorder %s297_s8, 1  ;;  %s297_s8 = sphi %s313_s8, %s11_s8   ;;  %s293_s7 = sphi %s311_s7, %s342_s7   ;;  %s289_s6 = sphi %s309_s6, %s341_s6  }
   0x3   : > { %p25_p1 = scmp.ge.s32.totalorder %s23_s9, 2  ;;  %p107_p2 = scmp.lt.s32.totalorder %s297_s8, 3 }
   0x5   : > { %s344_s9 = smov (%p25_p1, %s23_s9), 0  ;;  %p108_p3 = pnand %p245_p0, %p107_p2 }
   0x6   : > { %p132_p4 = scmp.lt.s32.totalorder (!%p108_p3), %s289_s6, 1 }
   0x7   : > { %111 = sbr.rel (%p108_p3) target bundleno = 146 (0x92), region = 24 }
   0xc   : > { %s346_s6 = smov (!%p132_p4, %s289_s6), 1  ;;  %vm154_vm0 = vcmask 1043456   ;;  %v161_v6 = vlaneseq  ;;  %vm165_vm1 = vcmask 24576  }
   0xd   : > { %s250_s10 = sshll.u32 %s346_s6, 3  ;;  %s146_s16 = scalar_lea.vmem %s340_s1, %s346_s6 }
   0xe   : > { %s140_s13 = scalar_lea.vmem %s339_s0, %s250_s10  ;;  %v162_v7 = vand.u32 127, %v161_v6 }
   0xf   : > { %v147_v0 = vld [vmem:[%s140_s13] sm:$0xff] }
  0x10   : > { %149 = vst [vmem:[#allocation1] ss:$2 sm:$0xff] %v147_v0 }
  0x17   : > { %v150_v1 = vld.sshfl [vmem:[#allocation1] sm:$0xff pattern:$0x75316420]  ;;  %v151_v2 = vld.sshfl [vmem:[#allocation1 + $0x8] sm:$0xff pattern:$0x75316420] }
  0x18   : > { %v155_v3 = vsel %vm154_vm0, %v150_v1, 0.0  ;;  %v156_v4 = vsel %vm154_vm0, %v151_v2, 0.0 }
  0x19   : > { %v157_v5 = vadd.f32 %v156_v4, %v155_v3 }
  0x1b   : > { %158 = vadd.xlane.f32.xlu0 %v157_v5 }
  0x8e   : > { %v159_v8 = vpop.xlane.xlu0 %158 }
  0x8f   : > { %v163_v9 = vperm.slane %v159_v8, %v162_v7 }
  0x91   : > { %166 = vst.msk [vmem:[%s146_s16] sm:$0x1] %vm165_vm1, %v163_v9 }
  0x92 PF: > { %s11_s8 = sadd.s32 1, %s297_s8   ;;  %s341_s6 = smov %s293_s7 }
  0x93   : > { %p8_p5 = scmp.ge.s32.totalorder %s11_s8, 4   ;;  %s342_s7 = smov %s344_s9 }
  0x95   :  { %10 = sbr.rel (!%p8_p5) target bundleno = 2 (0x2), region = 54 }

// kernel: se_block.3
= control target key start
LH: loop header
LB: loop body
LE: loop exit
PB: predicated region body
PF: predicated region fallthrough
CT: control target
= control target key end

     0   :  { %s670_s21 = smov 0   ;;  %s672_s22 = smov 0   ;;  %s722_s0 = inlined_call_operand.vmem [shape: f32[2,1,4], index: 0, kind: input, shape index: {}]   ;;  %s723_s1 = inlined_call_operand.vmem [shape: f32[4,2], index: 1, kind: input, shape index: {}]   ;;  %s724_s2 = inlined_call_operand.vmem [shape: f32[1,2], index: 2, kind: input, shape index: {}]   ;;  %s725_s3 = inlined_call_operand.vmem [shape: f32[2,4], index: 3, kind: input, shape index: {}]   ;;  %s726_s4 = inlined_call_operand.vmem [shape: f32[1,4], index: 4, kind: input, shape index: {}]   ;;  %s727_s5 = inlined_call_operand.vmem [shape: f32[2,4,256], index: 5, kind: input, shape index: {}]   ;;  %s728_s6 = inlined_call_operand.vmem [shape: f32[2,4,256], index: 6, kind: output, shape index: {}]  }
   0x1   :  { %s674_s23 = smov 0  }
   0x2 LB: > { %s28_s24 = sadd.s32 1, %s628_s22  ;;  %p566_p0 = scmp.ge.s32.totalorder %s632_s23, 1  ;;  %s632_s23 = sphi %s674_s23, %s16_s23   ;;  %s628_s22 = sphi %s672_s22, %s730_s22   ;;  %s624_s21 = sphi %s670_s21, %s729_s21  }
   0x3   : > { %p30_p1 = scmp.ge.s32.totalorder %s28_s24, 2  ;;  %p257_p2 = scmp.lt.s32.totalorder %s632_s23, 3 }
   0x5   : > { %s732_s24 = smov (%p30_p1, %s28_s24), 0  ;;  %p258_p3 = pnand %p566_p0, %p257_p2 }
   0x6   : > { %p305_p4 = scmp.lt.s32.totalorder (!%p258_p3), %s624_s21, 1 }
   0x7   : > { %261 = sbr.rel (%p258_p3) target bundleno = 425 (0x1a9), region = 44 }
   0xc   : > { %v335_v0 = vld [vmem:[%s723_s1] sm:$0xf]  ;;  %vm341_vm0 = vcmask 1043456   ;;  %s734_s21 = smov (!%p305_p4, %s624_s21), 1  ;;  %vm337_vm1 = vcmask 31744   ;;  %vm372_vm2 = vcmask 1041408   ;;  %v416_v8 = vlaneseq }
   0xd   : > { %571 = vmatpush.msk.msra.mxu0 %vm341_vm0, %v335_v0  ;;  %s307_s29 = scalar_lea.vmem %s722_s0, %s734_s21  ;;  %v366_v3 = vld [vmem:[%s725_s3] sm:$0x3]  ;;  %vm368_vm3 = vcmask 15360   ;;  %v634_v27 = vmov 839922192   ;;  %s578_s12 = sshll.u32 %s734_s21, 3 }
   0xe   : > { %v333_v1 = vld [vmem:[%s307_s29] sm:$0x1]  ;;  %573 = vmatpush.msk.msra.mxu1 %vm372_vm2, %v366_v3  ;;  %v417_v9 = vshrl.u32 %v416_v8, 7  ;;  %v425_v28 = vunpack.c.l.s4 %v634_v27  ;;  %s323_s15 = scalar_lea.vmem %s727_s5, %s578_s12  ;;  %s332_s18 = scalar_lea.vmem %s728_s6, %s578_s12 }
   0xf   : > { %v334_v2 = vmul.f32 0.00390625, %v333_v1  ;;  %v336_v4 = vld [vmem:[%s724_s2] sm:$0x1] }
  0x10   : > { %605 = vset.pattern.permute.xlu0 %v417_v9  ;;  %v367_v10 = vld [vmem:[%s726_s4] sm:$0x1]  ;;  %v426_v29 = vunpack.c.0.s8 %v425_v28 }
  0x11   : > { %572 = vmatmul.msk.f32.vlgmr.msra.gmra.mxu0 %vm337_vm1, %v334_v2  ;;  %v422_v30 = vld [vmem:[%s323_s15] sm:$0xff] }
  0x8e   : > { %v362_v5 = vpop.f32.mrf.mxu0 }
  0x8f   : > { %v363_v6 = vadd.f32 %v362_v5, %v336_v4 }
  0x91   : > { %v365_v7 = vmax.f32 %v363_v6, 0.0 }
  0x93   : > { %574 = vmatmul.msk.f32.vlgmr.msra.gmra.mxu1 %vm368_vm3, %v365_v7 }
 0x110   : > { %v393_v11 = vpop.f32.mrf.mxu1 }
 0x111   : > { %v394_v12 = vadd.f32 %v393_v11, %v367_v10 }
 0x113   : > { %v575_v13 = vmul.f32 -1.442695, %v394_v12 }
 0x115   : > { %606 = vpow2.f32 %v575_v13 }
 0x11b   : > { %v607_v14 = vpop.eup %606 }
 0x11c   : > { %v399_v15 = vadd.f32 1.0, %v607_v14 }
 0x11e   : > { %608 = vrcp.f32 %v399_v15  ;;  %v411_v19 = vand.u32 2147483648, %v399_v15  ;;  %v409_v21 = vand.u32 2147483647, %v399_v15  ;;  %vm405_vm5 = vweird.f32 %v399_v15 }
 0x120   : > { %v412_v23 = vor.u32 1.1754944e-38, %v411_v19  ;;  %vm410_vm7 = vcmp.eq.f32.partialorder %v409_v21, 8.507059e+37 }
 0x124   : > { %v609_v16 = vpop.eup %608 }
 0x125   : > { %v401_v17 = vmul.f32 %v609_v16, %v399_v15  ;;  %vm406_vm4 = vweird.f32 %v609_v16 }
 0x126   : > { %vm407_vm6 = vmor %vm405_vm5, %vm406_vm4 }
 0x127   : > { %v402_v18 = vsub.f32 1.0, %v401_v17 }
 0x129   : > { %v403_v20 = vmul.f32 %v609_v16, %v402_v18 }
 0x12b   : > { %v404_v22 = vadd.f32 %v609_v16, %v403_v20 }
 0x12d   : > { %v408_v24 = vsel %vm407_vm6, %v609_v16, %v404_v22 }
 0x12e   : > { %v413_v25 = vsel %vm410_vm7, %v412_v23, %v408_v24 }
 0x12f   : > { %v415_v26 = vperm.slane %v413_v25, 0 }
 0x131   : > { %420 = vperm.xlu0 %605, %v415_v26  }
 0x1a3   : > { %v421_v31 = vpop.permute.xlu0 %420 }
 0x1a4   : > { %v427_v32 = vperm.slane %v421_v31, %v426_v29 }
 0x1a6   : > { %v429_v33 = vmul.f32 %v427_v32, %v422_v30 }
 0x1a8   : > { %430 = vst [vmem:[%s332_s18] sm:$0xff] %v429_v33 }
 0x1a9 PF: > { %s16_s23 = sadd.s32 1, %s632_s23   ;;  %s729_s21 = smov %s628_s22 }
 0x1aa   : > { %p13_p5 = scmp.ge.s32.totalorder %s16_s23, 4   ;;  %s730_s22 = smov %s732_s24 }
 0x1ac   :  { %15 = sbr.rel (!%p13_p5) target bundleno = 2 (0x2), region = 83 }

</bundles_post_ra>
